<compile_context>
chip_gen: v7x
topology: tpu7x:2x2x1
jax: 0.10.0
libtpu: 0.0.40
codegen_flags: <defaults>
</compile_context>

<pallas_src>
import jax
import jax.numpy as jnp
from jax import lax
from jax.experimental import pallas as pl
from jax.experimental.pallas import tpu as pltpu


_VMEM_LIMIT = 64 * 1024 * 1024  # explicit scoped-VMEM budget (tiles stay far below this)


def _round_up(x, m):
    return (x + m - 1) // m * m


def _pick_tile(n_pad, cap):
    """Largest of {512, 256, 128} that divides n_pad and is <= cap."""
    t = 128
    for cand in (256, 512):
        if cand <= cap and n_pad % cand == 0:
            t = cand
    return t


# ---------------------------------------------------------------------------
# Pass 1: fused projection + hoisted per-node attention logits.
# ---------------------------------------------------------------------------
def _make_proj_kernel(fl_pad, fg_pad):
    def _proj_kernel(x_ref, w_ref, b_ref, att_s_ref, att_d_ref,
                     lin_ref, hgat_ref, asrc_ref, adst_ref):
        # h = x_comb @ [w_lin | w_gat] + [b_lin | 0]   (bf16 MXU operands, f32 accumulate)
        h = (jnp.dot(x_ref[...], w_ref[...], preferred_element_type=jnp.float32)
             + b_ref[...])
        h_gat = h[:, fl_pad:fl_pad + fg_pad]          # tile-aligned slice (128-multiple offset)
        lin_ref[...] = h[:, :fl_pad]                  # Linear-branch output (f32)
        hgat_ref[...] = h_gat.astype(jnp.bfloat16)    # bf16 slab -> halves pass-2 DMA
        # per-node attention logits (rank-1 dots), computed once here instead of per (i, j) tile
        asrc_ref[...] = lax.dot_general(att_s_ref[...], h_gat, (((1,), (1,)), ((), ())),
                                        preferred_element_type=jnp.float32)   # (1, tm)
        adst_ref[...] = lax.dot_general(h_gat, att_d_ref[...], (((1,), (1,)), ((), ())),
                                        preferred_element_type=jnp.float32)   # (tm, 1)
    return _proj_kernel


# ---------------------------------------------------------------------------
# Pass 2: GAT attention with online softmax over src tiles + empty-tile skip.
# ---------------------------------------------------------------------------
def _gat_kernel(counts_ref, adj_ref, h_src_ref, a_src_ref, a_dst_ref, b_gat_ref,
                out_ref, m_sc, l_sc, acc_sc):
    i = pl.program_id(0)
    j = pl.program_id(1)
    nj = pl.num_programs(1)

    @pl.when(j == 0)
    def _():
        m_sc[...] = jnp.full_like(m_sc, -1e30)
        l_sc[...] = jnp.zeros_like(l_sc)
        acc_sc[...] = jnp.zeros_like(acc_sc)

    @pl.when(counts_ref[i * nj + j] > 0)          # skip tiles with no edges at all
    def _():
        mask = adj_ref[...] != 0                                   # int compare, no f32 convert
        e = a_dst_ref[...] + a_src_ref[...]                        # (TM,1)+(1,TS) -> (TM,TS)
        e = jnp.where(e > 0, e, 0.2 * e)                           # leaky_relu(0.2)
        e = jnp.where(mask, e, jnp.float32(-1e30))                 # single select; exp underflows
        m_prev = m_sc[...]
        m_new = jnp.maximum(m_prev, jnp.max(e, axis=-1, keepdims=True))
        corr = jnp.exp(m_prev - m_new)
        # masked entries give exp(-huge) == 0 once the row has seen a real edge; rows that are
        # fully masked so far get their bogus contribution wiped by corr == 0 at the first edge,
        # and rows that stay fully masked are padding (sliced away by the wrapper).
        p = jnp.exp(e - m_new)
        l_sc[...] = corr * l_sc[...] + jnp.sum(p, axis=-1, keepdims=True)
        acc_sc[...] = corr * acc_sc[...] + jnp.dot(
            p.astype(jnp.bfloat16), h_src_ref[...],
            preferred_element_type=jnp.float32)
        m_sc[...] = m_new

    @pl.when(j == nj - 1)
    def _():
        inv_l = pl.reciprocal(jnp.maximum(l_sc[...], 1e-30), approx=True)
        out_ref[...] = acc_sc[...] * inv_l + b_gat_ref[...]


def hybrid_conv(x_lin, x_conv, edge_index, params):
    """Forward pass of HybridConv. Returns (out_lin, out_gat)."""
    N, fin = x_lin.shape
    fl = params["b_lin"].shape[0]
    fg = params["b_gat"].shape[0]
    k = 2 * fin

    fl_pad = _round_up(fl, 128)         # lane-aligned Linear column block
    fg_pad = _round_up(fg, 128)         # lane-aligned GAT column block
    f_pad = fl_pad + fg_pad

    n_pad = 128 if N <= 128 else _round_up(N, 256)
    tm1 = _pick_tile(n_pad, 512)        # pass-1 row tile (mem-bound: bigger amortizes overhead)
    tm2 = _pick_tile(n_pad, 256)        # pass-2 dst tile
    ts2 = _pick_tile(n_pad, 256)        # pass-2 src tile
    # TODO(synk): per-generation tuning — on v7x pick tm2 so n_pad//tm2 feeds both TCs and
    #             re-derive the VMEM budget against 64 MiB; on v5e consider pl.Buffered(3) on
    #             the adj / h_src specs to hide the lower HBM bandwidth.

    # ---- glue: concat, row padding, bf16 activations ----
    x_comb = jnp.concatenate([x_lin, x_conv], axis=-1)                       # (N, 2*Fin)
    x_comb = jnp.pad(x_comb, ((0, n_pad - N), (0, 0))).astype(jnp.bfloat16)

    # dense adjacency adj[dst, src] (int8), self-loops on real rows.
    src, dst = edge_index[0], edge_index[1]
    adj = jnp.zeros((n_pad, n_pad), jnp.int8).at[dst, src].set(1)
    adj = adj.at[jnp.arange(N), jnp.arange(N)].set(1)

    # per-(dst_tile, src_tile) nonzero counts for the empty-tile skip (scalar prefetch, SMEM).
    n_i, n_j = n_pad // tm2, n_pad // ts2
    counts = (adj.astype(jnp.int32)
              .reshape(n_i, tm2, n_j, ts2).sum(axis=(1, 3)).reshape(-1))

    # ---- fused / padded parameters (GAT columns start at the 128-aligned offset fl_pad) ----
    w_all = jnp.zeros((k, f_pad), jnp.float32)
    w_all = w_all.at[:fin, :fl].set(params["w_lin"].T)                       # Linear branch
    w_all = w_all.at[:, fl_pad:fl_pad + fg].set(params["w_gat"].T)           # GAT projection
    w_all = w_all.astype(jnp.bfloat16)

    b_all = jnp.zeros((1, f_pad), jnp.float32).at[0, :fl].set(params["b_lin"])
    att_src = jnp.zeros((1, fg_pad), jnp.float32).at[0, :fg].set(params["att_src"])
    att_dst = jnp.zeros((1, fg_pad), jnp.float32).at[0, :fg].set(params["att_dst"])
    b_gat = jnp.zeros((1, fg_pad), jnp.float32).at[0, :fg].set(params["b_gat"])

    # ---- pass 1: projection + hoisted logits, tiled over node rows ----
    cost1 = pl.CostEstimate(
        flops=int(2 * n_pad * k * f_pad + 4 * n_pad * fg_pad),
        transcendentals=0,
        bytes_accessed=int(n_pad * k * 2 + k * f_pad * 2 + n_pad * fl_pad * 4
                           + n_pad * fg_pad * 2 + n_pad * 8))
    lin_slab, h_gat, a_src_row, a_dst_col = pl.pallas_call(
        _make_proj_kernel(fl_pad, fg_pad),
        grid=(n_pad // tm1,),
        in_specs=[pl.BlockSpec((tm1, k), lambda i: (i, 0)),
                  pl.BlockSpec((k, f_pad), lambda i: (0, 0)),
                  pl.BlockSpec((1, f_pad), lambda i: (0, 0)),
                  pl.BlockSpec((1, fg_pad), lambda i: (0, 0)),
                  pl.BlockSpec((1, fg_pad), lambda i: (0, 0))],
        out_specs=[pl.BlockSpec((tm1, fl_pad), lambda i: (i, 0)),
                   pl.BlockSpec((tm1, fg_pad), lambda i: (i, 0)),
                   pl.BlockSpec((1, tm1), lambda i: (0, i)),
                   pl.BlockSpec((tm1, 1), lambda i: (i, 0))],
        out_shape=(jax.ShapeDtypeStruct((n_pad, fl_pad), jnp.float32),
                   jax.ShapeDtypeStruct((n_pad, fg_pad), jnp.bfloat16),
                   jax.ShapeDtypeStruct((1, n_pad), jnp.float32),
                   jax.ShapeDtypeStruct((n_pad, 1), jnp.float32)),
        compiler_params=pltpu.CompilerParams(
            dimension_semantics=("parallel",),
            vmem_limit_bytes=_VMEM_LIMIT),
        cost_estimate=cost1,
    )(x_comb, w_all, b_all, att_src, att_dst)

    # ---- pass 2: attention, grid = (dst tiles [parallel], src tiles [arbitrary]) ----
    cost2 = pl.CostEstimate(
        flops=int(2 * n_pad * n_pad * fg_pad + 10 * n_pad * n_pad),
        transcendentals=int(2 * n_pad * n_pad),
        bytes_accessed=int(n_pad * n_pad + n_i * n_pad * fg_pad * 2
                           + n_pad * fg_pad * 4 + n_i * n_pad * 4 + n_pad * 4))
    out_gat_slab = pl.pallas_call(
        _gat_kernel,
        grid_spec=pltpu.PrefetchScalarGridSpec(
            num_scalar_prefetch=1,
            grid=(n_i, n_j),
            in_specs=[pl.BlockSpec((tm2, ts2), lambda i, j, c: (i, j)),     # adjacency (int8)
                      pl.BlockSpec((ts2, fg_pad), lambda i, j, c: (j, 0)),  # h_src (bf16)
                      pl.BlockSpec((1, ts2), lambda i, j, c: (0, j)),       # a_src row
                      pl.BlockSpec((tm2, 1), lambda i, j, c: (i, 0)),       # a_dst column
                      pl.BlockSpec((1, fg_pad), lambda i, j, c: (0, 0))],   # b_gat
            out_specs=pl.BlockSpec((tm2, fg_pad), lambda i, j, c: (i, 0)),
            scratch_shapes=[pltpu.VMEM((tm2, 1), jnp.float32),              # m (running max)
                            pltpu.VMEM((tm2, 1), jnp.float32),              # l (running denom)
                            pltpu.VMEM((tm2, fg_pad), jnp.float32)]),       # acc
        out_shape=jax.ShapeDtypeStruct((n_pad, fg_pad), jnp.float32),
        compiler_params=pltpu.CompilerParams(
            dimension_semantics=("parallel", "arbitrary"),
            vmem_limit_bytes=_VMEM_LIMIT),
        cost_estimate=cost2,
    )(counts, adj, h_gat, a_src_row, a_dst_col, b_gat)

    out_lin = lin_slab[:N, :fl]
    out_gat = out_gat_slab[:N, :fg]
    return out_lin, out_gat


def _reference(x_lin, x_conv, edge_index, params):
    """Pure-JAX f32 reference (same math as GATConv heads=1 + Linear)."""
    N = x_lin.shape[0]
    x_comb = jnp.concatenate([x_lin, x_conv], axis=-1)
    src, dst = edge_index[0], edge_index[1]
    adj_t = jnp.zeros((N, N), jnp.float32).at[dst, src].set(1.0)
    adj_t = adj_t.at[jnp.arange(N), jnp.arange(N)].set(1.0)

    out_lin = x_lin @ params["w_lin"].T + params["b_lin"]

    h = x_comb @ params["w_gat"].T
    a_src = h @ params["att_src"]          # (N,)
    a_dst = h @ params["att_dst"]          # (N,)
    e = a_dst[:, None] + a_src[None, :]
    e = jnp.where(e > 0, e, 0.2 * e)
    mask = adj_t > 0
    e = jnp.where(mask, e, -jnp.inf)
    alpha = jax.nn.softmax(e, axis=-1) * mask
    out_gat = alpha @ h + params["b_gat"]
    return out_lin, out_gat


if __name__ == "__main__":
    key = jax.random.PRNGKey(0)
    N, Fin, Fout = 16, 8, 16  # in_features=8, out_features=16, 16 graph nodes

    ks = jax.random.split(key, 8)
    x_lin = jax.random.normal(ks[0], (N, Fin), jnp.float32)
    x_conv = jax.random.normal(ks[1], (N, Fin), jnp.float32)

    # deterministic graph: ring + a few extra edges (edge_index is [2, E], src/dst)
    ring_src = jnp.arange(N)
    ring_dst = (ring_src + 1) % N
    extra_src = jnp.array([0, 3, 5, 7, 10, 12], jnp.int32)
    extra_dst = jnp.array([8, 11, 2, 14, 1, 6], jnp.int32)
    edge_index = jnp.stack([jnp.concatenate([ring_src, extra_src]),
                            jnp.concatenate([ring_dst, extra_dst])])

    # deterministic synthetic parameters (shapes per the PyTorch module)
    params = {
        "w_lin": 0.1 * jax.random.normal(ks[2], (Fout, Fin), jnp.float32),      # nn.Linear
        "b_lin": 0.1 * jax.random.normal(ks[3], (Fout,), jnp.float32),
        "w_gat": 0.1 * jax.random.normal(ks[4], (Fout, 2 * Fin), jnp.float32),  # GATConv lin
        "att_src": 0.1 * jax.random.normal(ks[5], (Fout,), jnp.float32),
        "att_dst": 0.1 * jax.random.normal(ks[6], (Fout,), jnp.float32),
        "b_gat": 0.1 * jax.random.normal(ks[7], (Fout,), jnp.float32),
    }

    out_lin, out_gat = hybrid_conv(x_lin, x_conv, edge_index, params)
    jax.block_until_ready((out_lin, out_gat))

    ref_lin, ref_gat = _reference(x_lin, x_conv, edge_index, params)
    # bf16 MXU operands + approx reciprocal in the kernel vs a pure-f32 reference
    assert out_lin.shape == (N, Fout) and out_gat.shape == (N, Fout)
    assert jnp.allclose(out_lin, ref_lin, atol=2e-2, rtol=2e-2)
    assert jnp.allclose(out_gat, ref_gat, atol=2e-2, rtol=2e-2)
    print("KERNEL_OK")
</pallas_src>

<mosaic_0001>
module attributes {stable_mosaic.version = 11 : i64} {
  func.func @_proj_kernel(%arg0: i32, %arg1: memref<128x16xbf16, #tpu.memory_space<vmem>>, %arg2: memref<16x256xbf16, #tpu.memory_space<vmem>>, %arg3: memref<1x256xf32, #tpu.memory_space<vmem>>, %arg4: memref<1x128xf32, #tpu.memory_space<vmem>>, %arg5: memref<1x128xf32, #tpu.memory_space<vmem>>, %arg6: memref<128x128xf32, #tpu.memory_space<vmem>>, %arg7: memref<128x128xbf16, #tpu.memory_space<vmem>>, %arg8: memref<1x128xf32, #tpu.memory_space<vmem>>, %arg9: memref<128x1xf32, #tpu.memory_space<vmem>>) attributes {dimension_semantics = [#tpu.dimension_semantics<parallel>], iteration_bounds = array<i64: 1>, scalar_prefetch = 0 : i64, scratch_operands = 0 : i64, tpu.core_type = #tpu.core_type<tc>, window_params = [{transform_indices = @transform_0, window_bounds = array<i64: 128, 16>}, {pipeline_mode = #tpu.pipeline_mode<synchronous>, transform_indices = @transform_1, window_bounds = array<i64: 16, 256>}, {pipeline_mode = #tpu.pipeline_mode<synchronous>, transform_indices = @transform_2, window_bounds = array<i64: 1, 256>}, {pipeline_mode = #tpu.pipeline_mode<synchronous>, transform_indices = @transform_3, window_bounds = array<i64: 1, 128>}, {pipeline_mode = #tpu.pipeline_mode<synchronous>, transform_indices = @transform_4, window_bounds = array<i64: 1, 128>}, {transform_indices = @transform_5, window_bounds = array<i64: 128, 128>}, {transform_indices = @transform_6, window_bounds = array<i64: 128, 128>}, {transform_indices = @transform_7, window_bounds = array<i64: 1, 128>}, {transform_indices = @transform_8, window_bounds = array<i64: 128, 1>}]} {
    %c0 = arith.constant 0 : index
    %c0_0 = arith.constant 0 : index
    %0 = vector.load %arg1[%c0, %c0_0] : memref<128x16xbf16, #tpu.memory_space<vmem>>, vector<128x16xbf16>
    %c0_1 = arith.constant 0 : index
    %c0_2 = arith.constant 0 : index
    %1 = vector.load %arg2[%c0_1, %c0_2] : memref<16x256xbf16, #tpu.memory_space<vmem>>, vector<16x256xbf16>
    %cst = arith.constant dense<0.000000e+00> : vector<128x256xf32>
    %2 = tpu.matmul %0, %1, %cst {dimension_numbers = #tpu.dot_dimension_numbers<[1], [0], [0], [1], [0, 0, 1, 1], [], []>} : vector<128x16xbf16>, vector<16x256xbf16>, vector<128x256xf32> -> vector<128x256xf32>
    %c0_3 = arith.constant 0 : index
    %c0_4 = arith.constant 0 : index
    %3 = vector.load %arg3[%c0_3, %c0_4] : memref<1x256xf32, #tpu.memory_space<vmem>>, vector<1x256xf32>
    %4 = vector.broadcast %3 : vector<1x256xf32> to vector<128x256xf32>
    %5 = arith.addf %2, %4 : vector<128x256xf32>
    %6 = vector.extract_strided_slice %5 {offsets = [0, 128], sizes = [128, 128], strides = [1, 1]} : vector<128x256xf32> to vector<128x128xf32>
    %7 = vector.extract_strided_slice %5 {offsets = [0, 0], sizes = [128, 128], strides = [1, 1]} : vector<128x256xf32> to vector<128x128xf32>
    %c0_5 = arith.constant 0 : index
    %c0_6 = arith.constant 0 : index
    %8 = vector.load %arg6[%c0_5, %c0_6] : memref<128x128xf32, #tpu.memory_space<vmem>>, vector<128x128xf32>
    tpu.vector_store %arg6[%c0_5, %c0_6], %7 {strides = array<i32>} : memref<128x128xf32, #tpu.memory_space<vmem>>, vector<128x128xf32>,
    %9 = arith.truncf %6 : vector<128x128xf32> to vector<128x128xbf16>
    %c0_7 = arith.constant 0 : index
    %c0_8 = arith.constant 0 : index
    %10 = vector.load %arg7[%c0_7, %c0_8] : memref<128x128xbf16, #tpu.memory_space<vmem>>, vector<128x128xbf16>
    tpu.vector_store %arg7[%c0_7, %c0_8], %9 {strides = array<i32>} : memref<128x128xbf16, #tpu.memory_space<vmem>>, vector<128x128xbf16>,
    %c0_9 = arith.constant 0 : index
    %c0_10 = arith.constant 0 : index
    %11 = vector.load %arg4[%c0_9, %c0_10] : memref<1x128xf32, #tpu.memory_space<vmem>>, vector<1x128xf32>
    %cst_11 = arith.constant dense<0.000000e+00> : vector<1x128xf32>
    %12 = tpu.matmul %11, %6, %cst_11 {dimension_numbers = #tpu.dot_dimension_numbers<[1], [1], [0], [0], [0, 0, 1, 0], [], []>} : vector<1x128xf32>, vector<128x128xf32>, vector<1x128xf32> -> vector<1x128xf32>
    %c0_12 = arith.constant 0 : index
    %c0_13 = arith.constant 0 : index
    %13 = vector.load %arg8[%c0_12, %c0_13] : memref<1x128xf32, #tpu.memory_space<vmem>>, vector<1x128xf32>
    tpu.vector_store %arg8[%c0_12, %c0_13], %12 {strides = array<i32>} : memref<1x128xf32, #tpu.memory_space<vmem>>, vector<1x128xf32>,
    %c0_14 = arith.constant 0 : index
    %c0_15 = arith.constant 0 : index
    %14 = vector.load %arg5[%c0_14, %c0_15] : memref<1x128xf32, #tpu.memory_space<vmem>>, vector<1x128xf32>
    %cst_16 = arith.constant dense<0.000000e+00> : vector<128x1xf32>
    %15 = tpu.matmul %6, %14, %cst_16 {dimension_numbers = #tpu.dot_dimension_numbers<[1], [1], [0], [0], [0, 0, 1, 0], [], []>} : vector<128x128xf32>, vector<1x128xf32>, vector<128x1xf32> -> vector<128x1xf32>
    %c0_17 = arith.constant 0 : index
    %c0_18 = arith.constant 0 : index
    %16 = vector.load %arg9[%c0_17, %c0_18] : memref<128x1xf32, #tpu.memory_space<vmem>>, vector<128x1xf32>
    tpu.vector_store %arg9[%c0_17, %c0_18], %15 {strides = array<i32>} : memref<128x1xf32, #tpu.memory_space<vmem>>, vector<128x1xf32>,
    return
  }
  func.func @transform_0(%arg0: i32) -> (i32, i32) {
    %c0_i32 = arith.constant 0 : i32
    %c0_i32_0 = arith.constant 0 : i32
    return %arg0, %c0_i32 : i32, i32
  }
  func.func @transform_1(%arg0: i32) -> (i32, i32) {
    %c0_i32 = arith.constant 0 : i32
    %c0_i32_0 = arith.constant 0 : i32
    %c0_i32_1 = arith.constant 0 : i32
    return %c0_i32, %c0_i32_0 : i32, i32
  }
  func.func @transform_2(%arg0: i32) -> (i32, i32) {
    %c0_i32 = arith.constant 0 : i32
    %c0_i32_0 = arith.constant 0 : i32
    %c0_i32_1 = arith.constant 0 : i32
    return %c0_i32, %c0_i32_0 : i32, i32
  }
  func.func @transform_3(%arg0: i32) -> (i32, i32) {
    %c0_i32 = arith.constant 0 : i32
    %c0_i32_0 = arith.constant 0 : i32
    %c0_i32_1 = arith.constant 0 : i32
    return %c0_i32, %c0_i32_0 : i32, i32
  }
  func.func @transform_4(%arg0: i32) -> (i32, i32) {
    %c0_i32 = arith.constant 0 : i32
    %c0_i32_0 = arith.constant 0 : i32
    %c0_i32_1 = arith.constant 0 : i32
    return %c0_i32, %c0_i32_0 : i32, i32
  }
  func.func @transform_5(%arg0: i32) -> (i32, i32) {
    %c0_i32 = arith.constant 0 : i32
    %c0_i32_0 = arith.constant 0 : i32
    return %arg0, %c0_i32 : i32, i32
  }
  func.func @transform_6(%arg0: i32) -> (i32, i32) {
    %c0_i32 = arith.constant 0 : i32
    %c0_i32_0 = arith.constant 0 : i32
    return %arg0, %c0_i32 : i32, i32
  }
  func.func @transform_7(%arg0: i32) -> (i32, i32) {
    %c0_i32 = arith.constant 0 : i32
    %c0_i32_0 = arith.constant 0 : i32
    return %c0_i32, %arg0 : i32, i32
  }
  func.func @transform_8(%arg0: i32) -> (i32, i32) {
    %c0_i32 = arith.constant 0 : i32
    %c0_i32_0 = arith.constant 0 : i32
    return %arg0, %c0_i32 : i32, i32
  }
}

</mosaic_0001>

<bundles_post_ra>
// kernel: tpu_custom_call.1
= control target key start
LH: loop header
LB: loop body
LE: loop exit
PB: predicated region body
PF: predicated region fallthrough
CT: control target
= control target key end

     0   :  { %14 = vsyncpa [#allocation3], 0  ;;  %s1295_s0 = inlined_call_operand.hbm [shape: bf16[128,16], index: 0, kind: input, shape index: {}]   ;;  %s1296_s1 = inlined_call_operand.hbm [shape: bf16[16,256], index: 1, kind: input, shape index: {}]   ;;  %s1297_s2 = inlined_call_operand.hbm [shape: f32[1,256], index: 2, kind: input, shape index: {}]   ;;  %s1298_s3 = inlined_call_operand.hbm [shape: f32[1,128], index: 3, kind: input, shape index: {}]   ;;  %s1299_s4 = inlined_call_operand.hbm [shape: f32[1,128], index: 4, kind: input, shape index: {}]   ;;  %s1300_s5 = inlined_call_operand.hbm [shape: f32[128,128], index: 5, kind: output, shape index: {0}]   ;;  %s1301_s6 = inlined_call_operand.hbm [shape: bf16[128,128], index: 6, kind: output, shape index: {1}]   ;;  %s1302_s7 = inlined_call_operand.hbm [shape: f32[1,128], index: 7, kind: output, shape index: {2}]   ;;  %s1303_s8 = inlined_call_operand.hbm [shape: f32[128,1], index: 8, kind: output, shape index: {3}]  }
   0x1   :  { %15 = vsyncpa [#allocation6], 0 }
   0x2   :  { %16 = vsyncpa [#allocation9], 0 }
   0x3   :  { %17 = vsyncpa [#allocation4], 0 }
   0x4   :  { %18 = vsyncpa [#allocation13], 0 }
   0x5   :  { %19 = vsyncpa [#allocation16], 0  ;;  %s1024_s27 = smov [#allocation5]   ;;  %s814_s9 = scalar_lea.hbm %s1296_s1, 256 }
   0x6   :  { %s37_s28 = sshll.u32 %s1024_s27, 4  ;;  %p815_p0 = scmp.ne.s32.totalorder %s1296_s1, %s814_s9  ;;  %s38_s28 = int_to_ptr.vmem [resolvable:$true] %s37_s28 }
   0x7   :  { %p818_p1 = scmp.lt.u32.totalorder %s814_s9, %s1296_s1 }
   0x9   :  { %p820_p2 = pnand %p818_p1, %p815_p0 }
   0xb   :  { %823 = shalt.err (!%p820_p2)
}
   0xc   :  { %s824_s14 = scalar_lea.vmem %s38_s28, 256  ;;  %p829_p4 = scmp.lt.s32.totalorder %s38_s28, %s38_s28 }
   0xd   :  { %p825_p3 = scmp.ne.s32.totalorder %s38_s28, %s824_s14  ;;  %p830_p5 = scmp.lt.s32.totalorder %s824_s14, %s824_s14 }
   0xf   :  { %p831_p6 = por %p830_p5, %p829_p4 }
  0x11   :  { %p832_p7 = pnand %p831_p6, %p825_p3 }
  0x13   :  { %835 = shalt.err (!%p832_p7)
}
  0x14   :  { %s1025_s15 = smov 128   ;;  %s1026_s16 = smov 8  }
  0x15   :  { %43 = dma.hbm_to_vmem [thread:$0]  %s1296_s1, 256, %s38_s28, [#allocation6], %s1025_s15, %s1025_s15, %s1026_s16  }
  0x16   :  { %s1027_s19 = smov [#allocation8]   ;;  %s1028_s21 = smov [#allocation2]  }
  0x17   :  { %s60_s20 = sshll.u32 %s1027_s19, 4  ;;  %s25_s22 = sshll.u32 %s1028_s21, 4  ;;  %s61_s20 = int_to_ptr.vmem [resolvable:$true] %s60_s20  ;;  %s26_s22 = int_to_ptr.vmem [resolvable:$true] %s25_s22 }
  0x18   :  { %s836_s25 = scalar_lea.hbm %s1298_s3, 16 }
  0x19   :  { %p837_p8 = scmp.ne.s32.totalorder %s1298_s3, %s836_s25  ;;  %p840_p9 = scmp.lt.u32.totalorder %s836_s25, %s1298_s3 }
  0x1b   :  { %p842_p10 = pnand %p840_p9, %p837_p8 }
  0x1d   :  { %845 = shalt.err (!%p842_p10)
}
  0x1e   :  { %s846_s1 = scalar_lea.vmem %s61_s20, 16  ;;  %s850_s28 = scalar_lea.vmem %s61_s20, 32 }
  0x1f   :  { %p847_p11 = scmp.ne.s32.totalorder %s61_s20, %s846_s1  ;;  %p851_p12 = scmp.lt.s32.totalorder %s61_s20, %s61_s20 }
  0x20   :  { %p852_p13 = scmp.lt.s32.totalorder %s850_s28, %s846_s1 }
  0x22   :  { %p853_p0 = por %p852_p13, %p851_p12 }
  0x24   :  { %p854_p1 = pnand %p853_p0, %p847_p11 }
  0x26   :  { %857 = shalt.err (!%p854_p1)
}
  0x27   :  { %63 = dma.hbm_to_vmem [thread:$0]  %s1298_s3, 16, %s61_s20, [#allocation9]  }
  0x28   :  { %s858_s13 = scalar_lea.hbm %s1295_s0, 1024 }
  0x29   :  { %p859_p2 = scmp.ne.s32.totalorder %s1295_s0, %s858_s13  ;;  %p862_p3 = scmp.lt.u32.totalorder %s858_s13, %s1295_s0 }
  0x2b   :  { %p864_p4 = pnand %p862_p3, %p859_p2 }
  0x2d   :  { %867 = shalt.err (!%p864_p4)
}
  0x2e   :  { %s868_s21 = scalar_lea.vmem %s26_s22, 1024  ;;  %p873_p6 = scmp.lt.s32.totalorder %s26_s22, %s26_s22 }
  0x2f   :  { %p869_p5 = scmp.ne.s32.totalorder %s26_s22, %s868_s21  ;;  %p874_p7 = scmp.lt.s32.totalorder %s868_s21, %s868_s21 }
  0x31   :  { %p875_p8 = por %p874_p7, %p873_p6 }
  0x33   :  { %p876_p9 = pnand %p875_p8, %p869_p5 }
  0x35   :  { %879 = shalt.err (!%p876_p9)
}
  0x36   :  { %s1029_s3 = smov 64   ;;  %s1030_s20 = smov 4  }
  0x37   :  { %31 = dma.hbm_to_vmem [thread:$0]  %s1295_s0, 1024, %s26_s22, [#allocation3], %s1029_s3, %s1029_s3, %s1030_s20  }
  0x38   :  { %s1031_s25 = smov [#allocation7]   ;;  %s1032_s27 = smov [#allocation10]  }
  0x39   :  { %s50_s26 = sshll.u32 %s1031_s25, 4  ;;  %s70_s29 = sshll.u32 %s1032_s27, 4  ;;  %s51_s26 = int_to_ptr.vmem [resolvable:$true] %s50_s26  ;;  %s71_s29 = int_to_ptr.vmem [resolvable:$true] %s70_s29 }
  0x3a   :  { %s880_s28 = scalar_lea.hbm %s1297_s2, 32 }
  0x3b   :  { %p881_p10 = scmp.ne.s32.totalorder %s1297_s2, %s880_s28  ;;  %p884_p11 = scmp.lt.u32.totalorder %s880_s28, %s1297_s2 }
  0x3d   :  { %p886_p12 = pnand %p884_p11, %p881_p10 }
  0x3f   :  { %889 = shalt.err (!%p886_p12)
}
  0x40   :  { %s890_s0 = scalar_lea.vmem %s51_s26, 32  ;;  %p895_p0 = scmp.lt.s32.totalorder %s51_s26, %s51_s26 }
  0x41   :  { %p891_p13 = scmp.ne.s32.totalorder %s51_s26, %s890_s0  ;;  %p896_p1 = scmp.lt.s32.totalorder %s890_s0, %s890_s0 }
  0x43   :  { %p897_p2 = por %p896_p1, %p895_p0 }
  0x45   :  { %p898_p3 = pnand %p897_p2, %p891_p13 }
  0x47   :  { %901 = shalt.err (!%p898_p3)
}
  0x48   :  { %53 = dma.hbm_to_vmem [thread:$0]  %s1297_s2, 32, %s51_s26, [#allocation6]  }
  0x49   :  { %s902_s18 = scalar_lea.hbm %s1299_s4, 16 }
  0x4a   :  { %p903_p4 = scmp.ne.s32.totalorder %s1299_s4, %s902_s18  ;;  %p906_p5 = scmp.lt.u32.totalorder %s902_s18, %s1299_s4 }
  0x4c   :  { %p908_p6 = pnand %p906_p5, %p903_p4 }
  0x4e   :  { %911 = shalt.err (!%p908_p6)
}
  0x4f   :  { %s912_s25 = scalar_lea.vmem %s71_s29, 16  ;;  %s916_s27 = scalar_lea.vmem %s71_s29, 32 }
  0x50   :  { %p913_p7 = scmp.ne.s32.totalorder %s71_s29, %s912_s25  ;;  %p917_p8 = scmp.lt.s32.totalorder %s71_s29, %s71_s29 }
  0x51   :  { %p918_p9 = scmp.lt.s32.totalorder %s916_s27, %s912_s25 }
  0x53   :  { %p919_p10 = por %p918_p9, %p917_p8 }
  0x55   :  { %p920_p11 = pnand %p919_p10, %p913_p7 }
  0x57   :  { %923 = shalt.err (!%p920_p11)
}
  0x58   :  { %73 = dma.hbm_to_vmem [thread:$0]  %s1299_s4, 16, %s71_s29, [#allocation9]  }
  0x59   :  { %1012 = dma.done.wait [#allocation3], 1024  }
  0x5a   :  { %1013 = vsyncadd [#allocation3], 4294966272 }
  0x5b   :  { %1014 = dma.done.wait [#allocation6], 288  }
  0x5c   :  { %1015 = vsyncadd [#allocation6], 4294967008 }
  0x5d   :  { %1016 = dma.done.wait [#allocation9], 32  }
  0x5e   :  { %1017 = vsyncadd [#allocation9], 4294967264  ;;  %v1033_v0 = vmov 0   ;;  %v803_v1 = vld [vmem:[#allocation5 + $0x4] ss:$8 sps:$4 sm:$0xff]   ;;  %vm170_vm0 = vcmask 130048   ;;  %v110_v13 = vlaneseq }
  0x5f   :  { %227 = vmatprep.mubr.bf16.mxu0 %v1033_v0  ;;  %v805_v2 = vld [vmem:[#allocation5] ss:$8 sps:$4 sm:$0xff]   ;;  %195 = vmatprep.subr.bf16.mxu0 %v803_v1  ;;  %v808_v5 = vld [vmem:[#allocation2 + $0x10] sm:$0xff]   ;;  %v809_v6 = vld [vmem:[#allocation2 + $0x18] sm:$0xff]   ;;  %v1034_v11 = vmov 0.0|0.0   ;;  %vm1035_vm1 = vmmov 0  }
  0x60   :  { %v806_v3 = vld [vmem:[#allocation2] sm:$0xff]   ;;  %196 = vmatpush1.bf16.msra.mxu0 %v805_v2  ;;  %v807_v4 = vld [vmem:[#allocation2 + $0x8] sm:$0xff]   ;;  %v812_v9 = vld [vmem:[#allocation2 + $0x30] sm:$0xff]   ;;  %762 = vmatprep.subr.bf16.mxu1 %v1034_v11  ;;  %v1036_v12 = vmov 0.0   ;;  %v111_v14 = vshrl.u32 %v110_v13, 7  ;;  %vm531_vm2 = vcmask 7168  }
  0x61   :  { %v810_v7 = vld [vmem:[#allocation2 + $0x20] sm:$0xff]   ;;  %v811_v8 = vld [vmem:[#allocation2 + $0x28] sm:$0xff]   ;;  %v813_v10 = vld [vmem:[#allocation2 + $0x38] sm:$0xff]   ;;  %759 = vmatprep.mubr.msk.f32.mxu1 %vm1035_vm1, %v1036_v12  ;;  %s1037_s4 = smov [#allocation12]   ;;  %s1038_s30 = smov [#allocation11]  }
  0x62   :  { %v112_v15 = vsub.s32 0, %v111_v14  ;;  %v108_v16 = vld [vmem:[#allocation7] sm:$0x3]  ;;  %v116_v17 = vsub.s32 1, %v111_v14  ;;  %v1166_v23 = vld [vmem:[#allocation10] ss:$0 sm:$0xff] }
  0x63   :  { %622 = vmatmul.mubr.msk.bf16.vlgmr.msra.gmra.mrb[0].mxu0 %vm170_vm0, %v806_v3  ;;  %s565_s29 = sshll.u32 %s1037_s4, 4  ;;  %s553_s1 = sshll.u32 %s1038_s30, 4  ;;  %s566_s29 = int_to_ptr.vmem [resolvable:$true] %s565_s29  ;;  %s554_s1 = int_to_ptr.vmem [resolvable:$true] %s553_s1 }
  0x64   :  { %237 = vmatprep.mubr.bf16.mxu0 %v1033_v0  ;;  %v1161_v18 = vrot.slane %v108_v16, %v112_v15  ;;  %v1163_v19 = vrot.slane %v108_v16, %v116_v17  ;;  %s924_s28 = scalar_lea.vmem %s566_s29, 1024  ;;  %p929_p13 = scmp.lt.s32.totalorder %s566_s29, %s566_s29 }
  0x65   :  { %p925_p12 = scmp.ne.s32.totalorder %s566_s29, %s924_s28  ;;  %p930_p0 = scmp.lt.s32.totalorder %s924_s28, %s924_s28 }
  0x67   :  { %p931_p1 = por %p930_p0, %p929_p13 }
  0x69   :  { %p932_p2 = pnand %p931_p1, %p925_p12 }
  0x6b   :  { %623 = vmatmul.mubr.msk.bf16.gmra.mrb[4].mxu0 %vm170_vm0, %v807_v4 }
  0x6c   :  { %247 = vmatprep.mubr.bf16.mxu0 %v1033_v0 }
  0x73   :  { %624 = vmatmul.mubr.msk.bf16.gmra.mrb[8].mxu0 %vm170_vm0, %v808_v5 }
  0x74   :  { %257 = vmatprep.mubr.bf16.mxu0 %v1033_v0 }
  0x7b   :  { %625 = vmatmul.mubr.msk.bf16.gmra.mrb[12].mxu0 %vm170_vm0, %v809_v6 }
  0x7c   :  { %267 = vmatprep.mubr.bf16.mxu0 %v1033_v0 }
  0x83   :  { %626 = vmatmul.mubr.msk.bf16.gmra.mrb[16].mxu0 %vm170_vm0, %v810_v7 }
  0x84   :  { %277 = vmatprep.mubr.bf16.mxu0 %v1033_v0 }
  0x8b   :  { %627 = vmatmul.mubr.msk.bf16.gmra.mrb[20].mxu0 %vm170_vm0, %v811_v8 }
  0x8c   :  { %287 = vmatprep.mubr.bf16.mxu0 %v1033_v0 }
  0x93   :  { %628 = vmatmul.mubr.msk.bf16.gmra.mrb[24].mxu0 %vm170_vm0, %v812_v9 }
  0x94   :  { %297 = vmatprep.mubr.bf16.mxu0 %v1033_v0 }
  0x9b   :  { %629 = vmatmul.mubr.msk.bf16.gmra.mrb[28].mxu0 %vm170_vm0, %v813_v10 }
 0x136   :  { %v229_v20 = vpop.f32.mrb[0].mxu0 }
 0x137   :  { %v230_v21 = vadd.f32 %v229_v20, %v1161_v18  ;;  %v231_v22 = vpop.f32.mrb[1].mxu0 }
 0x138   :  { %v232_v24 = vadd.f32 %v231_v22, %v1163_v19  ;;  %v233_v25 = vpop.f32.mrb[2].mxu0 }
 0x139   :  { %308 = vst [vmem:[#allocation11] sm:$0xff] %v230_v21  ;;  %v234_v26 = vadd.f32 %v233_v25, %v1161_v18  ;;  %v235_v27 = vpop.f32.mrb[3].mxu0 }
 0x13a   :  { %v236_v28 = vadd.f32 %v235_v27, %v1163_v19  ;;  %v483_v29 = vmul.f32 %v1166_v23, %v232_v24 }
 0x13b   :  { %309 = vst [vmem:[#allocation11 + $0x8] sm:$0xff] %v234_v26 }
 0x13c   :  { %499 = vadd.xlane.f32.xlu0 %v483_v29  ;;  %v666_v30 = vpack.c.bf16 %v236_v28, %v232_v24  ;;  %v484_v32 = vmul.f32 %v1166_v23, %v236_v28 }
 0x13e   :  { %v239_v31 = vpop.f32.mrb[4].mxu0  ;;  %667 = vst [vmem:[#allocation12] sm:$0xff] %v666_v30   ;;  %764 = vmatpush3.bf16.xpose.msra.mxu1 %v666_v30 }
 0x13f   :  { %v240_v33 = vadd.f32 %v239_v31, %v1161_v18  ;;  %v241_v34 = vpop.f32.mrb[5].mxu0  ;;  %765 = vmatprep.subr.bf16.mxu1 %v1034_v11 }
 0x140   :  { %v242_v35 = vadd.f32 %v241_v34, %v1163_v19  ;;  %v243_v36 = vpop.f32.mrb[6].mxu0  ;;  %501 = vadd.xlane.f32.xlu0 %v484_v32 }
 0x141   :  { %310 = vst [vmem:[#allocation11 + $0x10] sm:$0xff] %v240_v33  ;;  %v244_v37 = vadd.f32 %v243_v36, %v1161_v18  ;;  %v245_v38 = vpop.f32.mrb[7].mxu0 }
 0x142   :  { %v246_v39 = vadd.f32 %v245_v38, %v1163_v19  ;;  %v485_v40 = vmul.f32 %v1166_v23, %v242_v35 }
 0x143   :  { %311 = vst [vmem:[#allocation11 + $0x18] sm:$0xff] %v244_v37 }
 0x144   :  { %v671_v41 = vpack.c.bf16 %v246_v39, %v242_v35  ;;  %503 = vadd.xlane.f32.xlu1 %v485_v40  ;;  %v486_v43 = vmul.f32 %v1166_v23, %v246_v39 }
 0x146   :  { %703 = vst [vmem:[#allocation12 + $0x8] sm:$0xff] %v671_v41   ;;  %v249_v42 = vpop.f32.mrb[8].mxu0  ;;  %767 = vmatpush3.bf16.xpose.msra.mxu1 %v671_v41 }
 0x147   :  { %v250_v44 = vadd.f32 %v249_v42, %v1161_v18  ;;  %v251_v45 = vpop.f32.mrb[9].mxu0  ;;  %768 = vmatprep.subr.bf16.mxu1 %v1034_v11 }
 0x148   :  { %v252_v46 = vadd.f32 %v251_v45, %v1163_v19  ;;  %v253_v47 = vpop.f32.mrb[10].mxu0  ;;  %505 = vadd.xlane.f32.xlu1 %v486_v43 }
 0x149   :  { %312 = vst [vmem:[#allocation11 + $0x20] sm:$0xff] %v250_v44  ;;  %v254_v48 = vadd.f32 %v253_v47, %v1161_v18  ;;  %v255_v49 = vpop.f32.mrb[11].mxu0 }
 0x14a   :  { %v256_v50 = vadd.f32 %v255_v49, %v1163_v19  ;;  %v487_v51 = vmul.f32 %v1166_v23, %v252_v46 }
 0x14b   :  { %313 = vst [vmem:[#allocation11 + $0x28] sm:$0xff] %v254_v48 }
 0x14c   :  { %v676_v52 = vpack.c.bf16 %v256_v50, %v252_v46  ;;  %507 = vadd.xlane.f32.xlu0 %v487_v51  ;;  %v488_v53 = vmul.f32 %v1166_v23, %v256_v50 }
 0x14e   :  { %704 = vst [vmem:[#allocation12 + $0x10] sm:$0xff] %v676_v52   ;;  %v259_v54 = vpop.f32.mrb[12].mxu0  ;;  %509 = vadd.xlane.f32.xlu1 %v488_v53  ;;  %770 = vmatpush3.bf16.xpose.msra.mxu1 %v676_v52 }
 0x14f   :  { %v260_v55 = vadd.f32 %v259_v54, %v1161_v18  ;;  %v261_v56 = vpop.f32.mrb[13].mxu0  ;;  %771 = vmatprep.subr.bf16.mxu1 %v1034_v11 }
 0x150   :  { %v262_v57 = vadd.f32 %v261_v56, %v1163_v19  ;;  %v263_v58 = vpop.f32.mrb[14].mxu0 }
 0x151   :  { %314 = vst [vmem:[#allocation11 + $0x30] sm:$0xff] %v260_v55  ;;  %v264_v59 = vadd.f32 %v263_v58, %v1161_v18  ;;  %v265_v60 = vpop.f32.mrb[15].mxu0 }
 0x152   :  { %v266_v61 = vadd.f32 %v265_v60, %v1163_v19  ;;  %v489_v62 = vmul.f32 %v1166_v23, %v262_v57 }
 0x153   :  { %315 = vst [vmem:[#allocation11 + $0x38] sm:$0xff] %v264_v59 }
 0x154   :  { %v681_v63 = vpack.c.bf16 %v266_v61, %v262_v57  ;;  %511 = vadd.xlane.f32.xlu0 %v489_v62  ;;  %v490_v0 = vmul.f32 %v1166_v23, %v266_v61 }
 0x156   :  { %705 = vst [vmem:[#allocation12 + $0x18] sm:$0xff] %v681_v63   ;;  %v269_v1 = vpop.f32.mrb[16].mxu0  ;;  %513 = vadd.xlane.f32.xlu1 %v490_v0  ;;  %773 = vmatpush3.bf16.xpose.msra.mxu1 %v681_v63 }
 0x157   :  { %v270_v2 = vadd.f32 %v269_v1, %v1161_v18  ;;  %v271_v3 = vpop.f32.mrb[17].mxu0  ;;  %774 = vmatprep.subr.bf16.mxu1 %v1034_v11 }
 0x158   :  { %v272_v4 = vadd.f32 %v271_v3, %v1163_v19  ;;  %v273_v5 = vpop.f32.mrb[18].mxu0 }
 0x159   :  { %316 = vst [vmem:[#allocation11 + $0x40] sm:$0xff] %v270_v2  ;;  %v274_v6 = vadd.f32 %v273_v5, %v1161_v18  ;;  %v275_v7 = vpop.f32.mrb[19].mxu0 }
 0x15a   :  { %v276_v8 = vadd.f32 %v275_v7, %v1163_v19  ;;  %v491_v9 = vmul.f32 %v1166_v23, %v272_v4 }
 0x15b   :  { %317 = vst [vmem:[#allocation11 + $0x48] sm:$0xff] %v274_v6 }
 0x15c   :  { %v686_v10 = vpack.c.bf16 %v276_v8, %v272_v4  ;;  %515 = vadd.xlane.f32.xlu0 %v491_v9  ;;  %v492_v12 = vmul.f32 %v1166_v23, %v276_v8 }
 0x15e   :  { %706 = vst [vmem:[#allocation12 + $0x20] sm:$0xff] %v686_v10   ;;  %v279_v13 = vpop.f32.mrb[20].mxu0  ;;  %517 = vadd.xlane.f32.xlu1 %v492_v12  ;;  %776 = vmatpush3.bf16.xpose.msra.mxu1 %v686_v10 }
 0x15f   :  { %v280_v14 = vadd.f32 %v279_v13, %v1161_v18  ;;  %v281_v15 = vpop.f32.mrb[21].mxu0  ;;  %777 = vmatprep.subr.bf16.mxu1 %v1034_v11 }
 0x160   :  { %v282_v16 = vadd.f32 %v281_v15, %v1163_v19  ;;  %v283_v17 = vpop.f32.mrb[22].mxu0 }
 0x161   :  { %318 = vst [vmem:[#allocation11 + $0x50] sm:$0xff] %v280_v14  ;;  %v284_v20 = vadd.f32 %v283_v17, %v1161_v18  ;;  %v285_v21 = vpop.f32.mrb[23].mxu0 }
 0x162   :  { %v286_v22 = vadd.f32 %v285_v21, %v1163_v19  ;;  %v493_v24 = vmul.f32 %v1166_v23, %v282_v16 }
 0x163   :  { %319 = vst [vmem:[#allocation11 + $0x58] sm:$0xff] %v284_v20 }
 0x164   :  { %v691_v25 = vpack.c.bf16 %v286_v22, %v282_v16  ;;  %519 = vadd.xlane.f32.xlu0 %v493_v24  ;;  %v494_v26 = vmul.f32 %v1166_v23, %v286_v22 }
 0x166   :  { %707 = vst [vmem:[#allocation12 + $0x28] sm:$0xff] %v691_v25   ;;  %v289_v27 = vpop.f32.mrb[24].mxu0  ;;  %521 = vadd.xlane.f32.xlu1 %v494_v26  ;;  %779 = vmatpush3.bf16.xpose.msra.mxu1 %v691_v25 }
 0x167   :  { %v290_v28 = vadd.f32 %v289_v27, %v1161_v18  ;;  %v291_v29 = vpop.f32.mrb[25].mxu0  ;;  %780 = vmatprep.subr.bf16.mxu1 %v1034_v11 }
 0x168   :  { %v292_v30 = vadd.f32 %v291_v29, %v1163_v19  ;;  %v293_v31 = vpop.f32.mrb[26].mxu0 }
 0x169   :  { %320 = vst [vmem:[#allocation11 + $0x60] sm:$0xff] %v290_v28  ;;  %v294_v32 = vadd.f32 %v293_v31, %v1161_v18  ;;  %v295_v33 = vpop.f32.mrb[27].mxu0 }
 0x16a   :  { %v296_v34 = vadd.f32 %v295_v33, %v1163_v19  ;;  %v495_v35 = vmul.f32 %v1166_v23, %v292_v30 }
 0x16b   :  { %321 = vst [vmem:[#allocation11 + $0x68] sm:$0xff] %v294_v32 }
 0x16c   :  { %v696_v36 = vpack.c.bf16 %v296_v34, %v292_v30  ;;  %523 = vadd.xlane.f32.xlu0 %v495_v35  ;;  %v496_v37 = vmul.f32 %v1166_v23, %v296_v34 }
 0x16e   :  { %708 = vst [vmem:[#allocation12 + $0x30] sm:$0xff] %v696_v36   ;;  %v299_v38 = vpop.f32.mrb[28].mxu0  ;;  %525 = vadd.xlane.f32.xlu1 %v496_v37  ;;  %782 = vmatpush3.bf16.xpose.msra.mxu1 %v696_v36 }
 0x16f   :  { %v300_v39 = vadd.f32 %v299_v38, %v1161_v18  ;;  %v301_v40 = vpop.f32.mrb[29].mxu0  ;;  %783 = vmatprep.subr.bf16.mxu1 %v1034_v11  ;;  %v404_v11 = vld [vmem:[#allocation8] sm:$0x1] }
 0x170   :  { %v302_v41 = vadd.f32 %v301_v40, %v1163_v19  ;;  %v303_v42 = vpop.f32.mrb[30].mxu0 }
 0x171   :  { %322 = vst [vmem:[#allocation11 + $0x70] sm:$0xff] %v300_v39  ;;  %v304_v43 = vadd.f32 %v303_v42, %v1161_v18  ;;  %v305_v44 = vpop.f32.mrb[31].mxu0 }
 0x172   :  { %v306_v45 = vadd.f32 %v305_v44, %v1163_v19  ;;  %v497_v46 = vmul.f32 %v1166_v23, %v302_v41 }
 0x173   :  { %323 = vst [vmem:[#allocation11 + $0x78] sm:$0xff] %v304_v43 }
 0x174   :  { %v701_v47 = vpack.c.bf16 %v306_v45, %v302_v41  ;;  %527 = vadd.xlane.f32.xlu0 %v497_v46  ;;  %v498_v48 = vmul.f32 %v1166_v23, %v306_v45 }
 0x176   :  { %709 = vst [vmem:[#allocation12 + $0x38] sm:$0xff] %v701_v47   ;;  %529 = vadd.xlane.f32.xlu1 %v498_v48  ;;  %785 = vmatpush3.bf16.xpose.msra.mxu1 %v701_v47 }
 0x17d   :  { %760 = vmatmul.mubr.f32.vlgmr.msra.gmra.mrb[0].mxu1 %v404_v11 }
 0x1c9   :  { %v500_v49 = vpop.xlane.xlu0 %499 }
 0x1ca   :  { %532 = vst.msk [vmem:[#allocation15] sm:$0xff] %vm531_vm2, %v500_v49 }
 0x1cd   :  { %v502_v18 = vpop.xlane.xlu0 %501 }
 0x1ce   :  { %533 = vst.msk [vmem:[#allocation15 + $0x8] sm:$0xff] %vm531_vm2, %v502_v18 }
 0x1d1   :  { %v504_v19 = vpop.xlane.xlu1 %503 }
 0x1d2   :  { %935 = shalt.err (!%p932_p2)
}
 0x1d3   :  { %s936_s11 = scalar_lea.hbm %s1301_s6, 1024 }
 0x1d4   :  { %p937_p3 = scmp.ne.s32.totalorder %s1301_s6, %s936_s11  ;;  %p940_p4 = scmp.lt.u32.totalorder %s936_s11, %s1301_s6 }
 0x1d6   :  { %p942_p5 = pnand %p940_p4, %p937_p3 }
 0x1d8   :  { %945 = shalt.err (!%p942_p5)
}
 0x1d9   :  { %571 = dma.vmem_to_hbm [thread:$0]  %s566_s29, 1024, %s1301_s6, [#allocation13], %s1029_s3, %s1029_s3, %s1030_s20   ;;  %534 = vst.msk [vmem:[#allocation15 + $0x10] sm:$0xff] %vm531_vm2, %v504_v19 }
 0x1da   :  { %s946_s18 = scalar_lea.vmem %s554_s1, 2048  ;;  %p951_p7 = scmp.lt.s32.totalorder %s554_s1, %s554_s1 }
 0x1db   :  { %p947_p6 = scmp.ne.s32.totalorder %s554_s1, %s946_s18  ;;  %p952_p8 = scmp.lt.s32.totalorder %s946_s18, %s946_s18 }
 0x1dd   :  { %p953_p9 = por %p952_p8, %p951_p7 }
 0x1df   :  { %p954_p10 = pnand %p953_p9, %p947_p6 }
 0x1e1   :  { %957 = shalt.err (!%p954_p10)
}
 0x1e2   :  { %s958_s23 = scalar_lea.hbm %s1300_s5, 2048 }
 0x1e3   :  { %p959_p11 = scmp.ne.s32.totalorder %s1300_s5, %s958_s23  ;;  %p962_p12 = scmp.lt.u32.totalorder %s958_s23, %s1300_s5 }
 0x1e5   :  { %p964_p13 = pnand %p962_p12, %p959_p11 }
 0x1e7   :  { %967 = shalt.err (!%p964_p13)
}
 0x1e8   :  { %559 = dma.vmem_to_hbm [thread:$0]  %s554_s1, 2048, %s1300_s5, [#allocation4], %s1025_s15, %s1025_s15, %s1026_s16   ;;  %v506_v23 = vpop.xlane.xlu1 %505  ;;  %v508_v50 = vpop.xlane.xlu0 %507 }
 0x1e9   :  { %535 = vst.msk [vmem:[#allocation15 + $0x18] sm:$0xff] %vm531_vm2, %v506_v23  ;;  %536 = vst.msk [vmem:[#allocation15 + $0x20] sm:$0xff] %vm531_vm2, %v508_v50  ;;  %s1039_s5 = smov [#allocation15]  }
 0x1ea   :  { %s587_s2 = sshll.u32 %s1039_s5, 4  ;;  %s588_s2 = int_to_ptr.vmem [resolvable:$true] %s587_s2 }
 0x1eb   :  { %s968_s26 = scalar_lea.vmem %s588_s2, 2048  ;;  %p973_p1 = scmp.lt.s32.totalorder %s588_s2, %s588_s2 }
 0x1ec   :  { %v510_v51 = vpop.xlane.xlu1 %509  ;;  %v512_v52 = vpop.xlane.xlu0 %511  ;;  %p969_p0 = scmp.ne.s32.totalorder %s588_s2, %s968_s26  ;;  %p974_p2 = scmp.lt.s32.totalorder %s968_s26, %s968_s26 }
 0x1ed   :  { %537 = vst.msk [vmem:[#allocation15 + $0x28] sm:$0xff] %vm531_vm2, %v510_v51  ;;  %538 = vst.msk [vmem:[#allocation15 + $0x30] sm:$0xff] %vm531_vm2, %v512_v52 }
 0x1ee   :  { %p975_p3 = por %p974_p2, %p973_p1 }
 0x1f0   :  { %v514_v53 = vpop.xlane.xlu1 %513  ;;  %v516_v54 = vpop.xlane.xlu0 %515  ;;  %p976_p4 = pnand %p975_p3, %p969_p0 }
 0x1f1   :  { %539 = vst.msk [vmem:[#allocation15 + $0x38] sm:$0xff] %vm531_vm2, %v514_v53  ;;  %540 = vst.msk [vmem:[#allocation15 + $0x40] sm:$0xff] %vm531_vm2, %v516_v54 }
 0x1f4   :  { %v518_v55 = vpop.xlane.xlu1 %517  ;;  %v520_v56 = vpop.xlane.xlu0 %519 }
 0x1f5   :  { %541 = vst.msk [vmem:[#allocation15 + $0x48] sm:$0xff] %vm531_vm2, %v518_v55  ;;  %542 = vst.msk [vmem:[#allocation15 + $0x50] sm:$0xff] %vm531_vm2, %v520_v56 }
 0x1f8   :  { %v522_v57 = vpop.xlane.xlu1 %521 }
 0x1f9   :  { %543 = vst.msk [vmem:[#allocation15 + $0x58] sm:$0xff] %vm531_vm2, %v522_v57  ;;  %v524_v58 = vpop.xlane.xlu0 %523 }
 0x1fa   :  { %544 = vst.msk [vmem:[#allocation15 + $0x60] sm:$0xff] %vm531_vm2, %v524_v58 }
 0x1fc   :  { %v526_v59 = vpop.xlane.xlu1 %525 }
 0x1fd   :  { %545 = vst.msk [vmem:[#allocation15 + $0x68] sm:$0xff] %vm531_vm2, %v526_v59 }
 0x201   :  { %v528_v60 = vpop.xlane.xlu0 %527 }
 0x202   :  { %546 = vst.msk [vmem:[#allocation15 + $0x70] sm:$0xff] %vm531_vm2, %v528_v60 }
 0x203   :  { %v530_v61 = vpop.xlane.xlu1 %529 }
 0x204   :  { %547 = vst.msk [vmem:[#allocation15 + $0x78] sm:$0xff] %vm531_vm2, %v530_v61 }
 0x205   :  { %979 = shalt.err (!%p976_p4)
}
 0x206   :  { %s980_s30 = scalar_lea.hbm %s1303_s8, 2048 }
 0x207   :  { %p981_p5 = scmp.ne.s32.totalorder %s1303_s8, %s980_s30  ;;  %p984_p6 = scmp.lt.u32.totalorder %s980_s30, %s1303_s8 }
 0x209   :  { %p986_p7 = pnand %p984_p6, %p981_p5 }
 0x20b   :  { %989 = shalt.err (!%p986_p7)
}
 0x20c   :  { %593 = dma.vmem_to_hbm [thread:$0]  %s588_s2, 2048, %s1303_s8, [#allocation16], %s1025_s15, %s1025_s15, %s1026_s16  }
 0x20d   :  { %s1040_s0 = smov [#allocation14]  }
 0x20e   :  { %s578_s22 = sshll.u32 %s1040_s0, 4  ;;  %s579_s22 = int_to_ptr.vmem [resolvable:$true] %s578_s22 }
 0x20f   :  { %s990_s13 = scalar_lea.vmem %s579_s22, 16  ;;  %s994_s14 = scalar_lea.vmem %s579_s22, 32 }
 0x210   :  { %p991_p8 = scmp.ne.s32.totalorder %s579_s22, %s990_s13  ;;  %p995_p9 = scmp.lt.s32.totalorder %s579_s22, %s579_s22 }
 0x211   :  { %p996_p10 = scmp.lt.s32.totalorder %s994_s14, %s990_s13 }
 0x213   :  { %p997_p11 = por %p996_p10, %p995_p9 }
 0x215   :  { %p998_p12 = pnand %p997_p11, %p991_p8 }
 0x250   :  { %v471_v62 = vpop.f32.mrb[0].mxu1 }
 0x251   :  { %475 = vst [vmem:[#allocation14] sm:$0x1] %v471_v62  ;;  %v761_v63 = vpop.f32.mrb[1].mxu1 }
 0x252   :  { %1001 = shalt.err (!%p998_p12)
}
 0x253   :  { %s1002_s19 = scalar_lea.hbm %s1302_s7, 16 }
 0x254   :  { %p1003_p13 = scmp.ne.s32.totalorder %s1302_s7, %s1002_s19  ;;  %p1006_p0 = scmp.lt.u32.totalorder %s1002_s19, %s1302_s7 }
 0x256   :  { %p1008_p1 = pnand %p1006_p0, %p1003_p13 }
 0x258   :  { %1011 = shalt.err (!%p1008_p1)
}
 0x259   :  { %581 = dma.vmem_to_hbm [thread:$0]  %s579_s22, 16, %s1302_s7, [#allocation13]  }
 0x25a   :  { %1018 = dma.done.wait [#allocation4], 2048  }
 0x25b   :  { %1019 = vsyncadd [#allocation4], 4294965248 }
 0x25c   :  { %1020 = dma.done.wait [#allocation13], 1040  }
 0x25d   :  { %1021 = vsyncadd [#allocation13], 4294966256 }
 0x25e   :  { %1022 = dma.done.wait [#allocation16], 2048  }
 0x25f   :  { %1023 = vsyncadd [#allocation16], 4294965248 }
 0x260   :  { %606 = vsyncpa [#allocation3], 1 }
 0x261   :  { %607 = vsyncpa [#allocation6], 1 }
 0x262   :  { %608 = vsyncpa [#allocation9], 1 }
 0x263   :  { %609 = vsyncpa [#allocation4], 1 }
 0x264   :  { %610 = vsyncpa [#allocation13], 1 }
 0x265   :  { %611 = vsyncpa [#allocation16], 1 }

</bundles_post_ra>
